<compile_context>
chip_gen: v7x
topology: tpu7x:2x2x1
jax: 0.10.0
libtpu: 0.0.40
codegen_flags: <defaults>
</compile_context>

<pallas_src>
import functools

import jax
import jax.numpy as jnp
from jax.experimental import pallas as pl
from jax.experimental.pallas import tpu as pltpu

LRELU_SLOPE = 0.1

# Set to jnp.bfloat16 on v6e/v7x for ~2-4x MXU throughput (accumulation stays
# f32 either way); default f32 preserves exact reference semantics.
MATMUL_DTYPE = jnp.float32

# (C_in, C_out, kernel, stride, groups, padding) for DiscriminatorS convs.
_CONV_CFGS = [
    (1,    128, 15, 1,  1,  7),
    (128,  128, 41, 2,  4, 20),
    (128,  256, 41, 2, 16, 20),
    (256,  512, 41, 4, 16, 20),
    (512, 1024, 41, 4, 16, 20),
    (1024, 1024, 41, 1, 16, 20),
    (1024, 1024,  5, 1,  1,  2),
]
_POST_CFG = (1024, 1, 3, 1, 1, 1)


# --------------------------------------------------------------------------
# Kernel
# --------------------------------------------------------------------------
def _conv1d_kernel(x_ref, w_ref, b_ref, o_ref, *, kq, cin2, chunk,
                   apply_lrelu, compute_dtype):
    """One (group-block, out-channel-block, batch) grid step.

    x_ref: (g_tile, Cin2, L2)         polyphase (stride-1 equivalent) input
    w_ref: (g_tile, co_tile, Kq*Cin2) im2col weight (tap-major)
    b_ref: (g_tile, co_tile, 1)
    o_ref: (g_tile, co_tile, T_out)
    """
    g_tile, co_tile, t_out = o_ref.shape
    n_chunks = -(-kq // chunk)

    for g in range(g_tile):                      # static, small (<= 8)
        acc = jnp.zeros((co_tile, t_out), jnp.float32)
        for c in range(n_chunks):                # static; chunk*Cin2 ~ 256
            q0 = c * chunk
            q1 = min(kq, q0 + chunk)
            pieces = [x_ref[g, :, q:q + t_out] for q in range(q0, q1)]
            cols = pieces[0] if len(pieces) == 1 else jnp.concatenate(pieces, axis=0)
            wc = w_ref[g, :, q0 * cin2:q1 * cin2]
            acc = acc + jnp.dot(wc.astype(compute_dtype),
                                cols.astype(compute_dtype),
                                preferred_element_type=jnp.float32)
        acc = acc + b_ref[g]
        if apply_lrelu:
            acc = jnp.where(acc >= 0.0, acc, LRELU_SLOPE * acc)
        o_ref[g] = acc.astype(o_ref.dtype)


# --------------------------------------------------------------------------
# Parameter preparation (done once, outside the hot path)
# --------------------------------------------------------------------------
def prepare_conv_layer(w, b, *, stride, groups, padding):
    """Fold PyTorch Conv1d weights into the polyphase/im2col layout.

    w: (C_out, C_in//G, K), b: (C_out,)
    Returns dict with w2: (G, C_out//G, Kq*Cin2), b2: (G, C_out//G, 1).
    """
    C_out, C_in_pg, K = w.shape
    G, s = groups, stride
    C_out_pg = C_out // G
    Kq = -(-K // s)
    Cin2 = C_in_pg * s

    wp = jnp.pad(w, ((0, 0), (0, 0), (0, Kq * s - K)))      # zero taps k >= K
    wp = wp.reshape(C_out, C_in_pg, Kq, s)                  # k = q*s + r
    wp = jnp.transpose(wp, (0, 2, 1, 3))                    # (C_out, Kq, Cpg, s)
    w2 = wp.reshape(G, C_out_pg, Kq * Cin2)                 # row = q*Cin2 + c*s + r
    b2 = b.reshape(G, C_out_pg, 1)
    return dict(w2=w2, b2=b2, K=K, stride=s, groups=G, padding=padding,
                C_in=C_in_pg * G, C_out=C_out)


def prepare_discriminator_params(raw_params):
    prepared = []
    for (w, b), (_, _, _, s, g, p) in zip(raw_params, _CONV_CFGS + [_POST_CFG]):
        prepared.append(prepare_conv_layer(w, b, stride=s, groups=g, padding=p))
    return prepared


def init_discriminator_params(key):
    params = []
    for (cin, cout, k, _, g, _) in _CONV_CFGS + [_POST_CFG]:
        key, kw, kb = jax.random.split(key, 3)
        fan_in = (cin // g) * k
        bound = 1.0 / (fan_in ** 0.5)
        w = jax.random.uniform(kw, (cout, cin // g, k), jnp.float32,
                               minval=-bound, maxval=bound)
        bias = jax.random.uniform(kb, (cout,), jnp.float32,
                                  minval=-bound, maxval=bound)
        params.append((w, bias))
    return params


# --------------------------------------------------------------------------
# Conv wrapper
# --------------------------------------------------------------------------
def _polyphase_input(x, *, K, stride, padding, groups):
    """Zero-pad and polyphase-split so the conv becomes stride-1.

    For stride-1 layers this is just a pad + free reshape (no transpose copy).
    """
    B, C_in, T = x.shape
    s, G = stride, groups
    C_in_pg = C_in // G
    T_pad = T + 2 * padding
    T_out = (T_pad - K) // s + 1
    Kq = -(-K // s)
    L2 = T_out + Kq - 1
    L_ext = s * L2
    pad_right = padding + max(0, L_ext - T_pad)
    xp = jnp.pad(x, ((0, 0), (0, 0), (padding, pad_right)))[:, :, :L_ext]
    if s == 1:
        xp = xp.reshape(B, G, C_in_pg, L2)
    else:
        xp = xp.reshape(B, G, C_in_pg, L2, s)
        xp = jnp.transpose(xp, (0, 1, 2, 4, 3)).reshape(B, G, C_in_pg * s, L2)
    return xp, T_out, L2


def _pick_tiles(G, C_out_pg):
    """Block groups / out-channels so each grid step does ~128-256 channels.

    g_tile is capped at 8 to bound static unrolling inside the kernel.
    """
    if G == 1:
        g_tile = 1
        co_tile = C_out_pg
        while co_tile > 256 and co_tile % 2 == 0:
            co_tile //= 2
    else:
        co_tile = C_out_pg
        g_tile = min(G, 8, max(1, 256 // max(1, C_out_pg)))
        while G % g_tile:
            g_tile -= 1
    return g_tile, co_tile


def conv1d_pallas(x, layer, *, apply_lrelu):
    """Grouped 1-D conv (PyTorch Conv1d semantics) + optional leaky ReLU."""
    w2, b2 = layer["w2"], layer["b2"]
    K, s, G, p = layer["K"], layer["stride"], layer["groups"], layer["padding"]
    C_out = layer["C_out"]
    B = x.shape[0]
    _, C_out_pg, KC = w2.shape
    Kq = -(-K // s)
    Cin2 = KC // Kq

    xp, T_out, L2 = _polyphase_input(x, K=K, stride=s, padding=p, groups=G)

    g_tile, co_tile = _pick_tiles(G, C_out_pg)
    n_g, n_co = G // g_tile, C_out_pg // co_tile
    # taps per im2col chunk: aim for ~256-deep MXU contraction
    chunk = max(1, min(Kq, 256 // max(1, Cin2)))

    kernel = functools.partial(
        _conv1d_kernel, kq=Kq, cin2=Cin2, chunk=chunk,
        apply_lrelu=apply_lrelu, compute_dtype=MATMUL_DTYPE)

    out = pl.pallas_call(
        kernel,
        out_shape=jax.ShapeDtypeStruct((B, G, C_out_pg, T_out), x.dtype),
        grid_spec=pltpu.PrefetchScalarGridSpec(
            num_scalar_prefetch=0,
            # batch innermost: weight/bias block index is constant across it,
            # so the (large) weight tiles are NOT re-DMA'd per batch element.
            grid=(n_g, n_co, B),
            in_specs=[
                pl.BlockSpec((pl.Squeezed(), g_tile, Cin2, L2),
                             lambda gi, ci, bi: (bi, gi, 0, 0)),
                pl.BlockSpec((g_tile, co_tile, KC),
                             lambda gi, ci, bi: (gi, ci, 0)),
                pl.BlockSpec((g_tile, co_tile, 1),
                             lambda gi, ci, bi: (gi, ci, 0)),
            ],
            out_specs=pl.BlockSpec((pl.Squeezed(), g_tile, co_tile, T_out),
                                   lambda gi, ci, bi: (bi, gi, ci, 0)),
        ),
        compiler_params=pltpu.CompilerParams(
            dimension_semantics=("parallel", "parallel", "parallel"),
            vmem_limit_bytes=32 * 1024 * 1024),
    )(xp, w2, b2)
    return out.reshape(B, C_out, T_out)


# --------------------------------------------------------------------------
# MSD forward
# --------------------------------------------------------------------------
_POOL_LAYER = None


def _get_pool_layer():
    # AvgPool1d(kernel=4, stride=2, padding=2), count_include_pad=True
    # == conv with constant 1/4 taps on the single input channel.
    global _POOL_LAYER
    if _POOL_LAYER is None:
        w = jnp.full((1, 1, 4), 0.25, jnp.float32)
        b = jnp.zeros((1,), jnp.float32)
        _POOL_LAYER = prepare_conv_layer(w, b, stride=2, groups=1, padding=2)
    return _POOL_LAYER


def avg_pool1d_pallas(x):
    return conv1d_pallas(x, _get_pool_layer(), apply_lrelu=False)


def discriminator_s(prepared, x):
    fmap = []
    for layer in prepared[:-1]:
        x = conv1d_pallas(x, layer, apply_lrelu=True)
        fmap.append(x)
    x = conv1d_pallas(x, prepared[-1], apply_lrelu=False)
    fmap.append(x)
    x = x.reshape(x.shape[0], -1)       # torch.flatten(x, 1, -1)
    return x, fmap


def multi_scale_discriminator(all_prepared, y, y_hat):
    B = y.shape[0]
    # weights are shared between the real / generated passes -> batch them.
    yy = jnp.concatenate([y, y_hat], axis=0)
    y_d_rs, y_d_gs, fmap_rs, fmap_gs = [], [], [], []
    for i, prepared in enumerate(all_prepared):
        if i != 0:
            yy = avg_pool1d_pallas(yy)
        score, fmap = discriminator_s(prepared, yy)
        y_d_rs.append(score[:B])
        y_d_gs.append(score[B:])
        fmap_rs.append([f[:B] for f in fmap])
        fmap_gs.append([f[B:] for f in fmap])
    return y_d_rs, y_d_gs, fmap_rs, fmap_gs


# --------------------------------------------------------------------------
# Reference (for a tiny correctness check only)
# --------------------------------------------------------------------------
def _reference_conv1d(x, w, b, *, stride, groups, padding):
    out = jax.lax.conv_general_dilated(
        x, w, window_strides=(stride,), padding=[(padding, padding)],
        dimension_numbers=("NCH", "OIH", "NCH"),
        feature_group_count=groups, precision=jax.lax.Precision.HIGHEST)
    return out + b[None, :, None]


if __name__ == "__main__":
    root = jax.random.PRNGKey(0)
    k_y, k_yh, k_params, k_check = jax.random.split(root, 4)

    # --- tiny self-check: grouped, strided conv + bias + leaky ReLU ---------
    kx, kw, kb = jax.random.split(k_check, 3)
    xs = jax.random.normal(kx, (2, 8, 32), jnp.float32)
    ws = jax.random.normal(kw, (16, 2, 7), jnp.float32) * 0.2
    bs = jax.random.normal(kb, (16,), jnp.float32) * 0.1
    lyr = prepare_conv_layer(ws, bs, stride=2, groups=4, padding=3)
    got = conv1d_pallas(xs, lyr, apply_lrelu=True)
    ref = _reference_conv1d(xs, ws, bs, stride=2, groups=4, padding=3)
    ref = jnp.where(ref >= 0.0, ref, LRELU_SLOPE * ref)
    max_err = float(jnp.max(jnp.abs(got - ref)))
    assert max_err < 1e-4, f"grouped strided conv mismatch: {max_err}"

    # --- full MSD forward on small audio ------------------------------------
    B, T = 2, 256
    y = jax.random.normal(k_y, (B, 1, T), dtype=jnp.float32)
    y_hat = jax.random.normal(k_yh, (B, 1, T), dtype=jnp.float32)

    disc_keys = jax.random.split(k_params, 3)
    all_prepared = [prepare_discriminator_params(init_discriminator_params(k))
                    for k in disc_keys]

    outs = multi_scale_discriminator(all_prepared, y, y_hat)
    jax.block_until_ready(outs)

    y_d_rs, y_d_gs, fmap_rs, fmap_gs = outs
    assert len(y_d_rs) == 3 and len(y_d_gs) == 3
    assert all(len(f) == 8 for f in fmap_rs) and all(len(f) == 8 for f in fmap_gs)
    assert all(s.shape[0] == B for s in y_d_rs + y_d_gs)
    print("KERNEL_OK")
</pallas_src>

<mosaic_0001>
module attributes {stable_mosaic.version = 11 : i64} {
  func.func @_conv1d_kernel(%arg0: i32, %arg1: i32, %arg2: i32, %arg3: memref<1x4x4x19xf32, #tpu.memory_space<vmem>>, %arg4: memref<4x4x16xf32, #tpu.memory_space<vmem>>, %arg5: memref<4x4x1xf32, #tpu.memory_space<vmem>>, %arg6: memref<1x4x4x16xf32, #tpu.memory_space<vmem>>) attributes {dimension_semantics = [#tpu.dimension_semantics<parallel>, #tpu.dimension_semantics<parallel>, #tpu.dimension_semantics<parallel>], iteration_bounds = array<i64: 1, 1, 2>, scalar_prefetch = 0 : i64, scratch_operands = 0 : i64, tpu.core_type = #tpu.core_type<tc>, window_params = [{transform_indices = @transform_0, window_bounds = array<i64: 1, 4, 4, 19>}, {transform_indices = @transform_1, window_bounds = array<i64: 4, 4, 16>}, {transform_indices = @transform_2, window_bounds = array<i64: 4, 4, 1>}, {transform_indices = @transform_3, window_bounds = array<i64: 1, 4, 4, 16>}]} {
    %cst = arith.constant 0.000000e+00 : f32
    %0 = vector.broadcast %cst : f32 to vector<4x16xf32>
    %c0 = arith.constant 0 : index
    %c0_0 = arith.constant 0 : index
    %c0_1 = arith.constant 0 : index
    %c0_2 = arith.constant 0 : index
    %1 = vector.load %arg3[%c0, %c0_0, %c0_1, %c0_2] : memref<1x4x4x19xf32, #tpu.memory_space<vmem>>, vector<1x1x4x16xf32>
    %2 = vector.shape_cast %1 : vector<1x1x4x16xf32> to vector<4x16xf32>
    %c0_3 = arith.constant 0 : index
    %c0_4 = arith.constant 0 : index
    %c0_5 = arith.constant 0 : index
    %c1 = arith.constant 1 : index
    %3 = vector.load %arg3[%c0_3, %c0_4, %c0_5, %c1] : memref<1x4x4x19xf32, #tpu.memory_space<vmem>>, vector<1x1x4x16xf32>
    %4 = vector.shape_cast %3 : vector<1x1x4x16xf32> to vector<4x16xf32>
    %c0_6 = arith.constant 0 : index
    %c0_7 = arith.constant 0 : index
    %c0_8 = arith.constant 0 : index
    %c2 = arith.constant 2 : index
    %5 = vector.load %arg3[%c0_6, %c0_7, %c0_8, %c2] : memref<1x4x4x19xf32, #tpu.memory_space<vmem>>, vector<1x1x4x16xf32>
    %6 = vector.shape_cast %5 : vector<1x1x4x16xf32> to vector<4x16xf32>
    %c0_9 = arith.constant 0 : index
    %c0_10 = arith.constant 0 : index
    %c0_11 = arith.constant 0 : index
    %c3 = arith.constant 3 : index
    %7 = vector.load %arg3[%c0_9, %c0_10, %c0_11, %c3] : memref<1x4x4x19xf32, #tpu.memory_space<vmem>>, vector<1x1x4x16xf32>
    %8 = vector.shape_cast %7 : vector<1x1x4x16xf32> to vector<4x16xf32>
    %9 = tpu.concatenate %2, %4, %6, %8 in 0 : vector<4x16xf32>, vector<4x16xf32>, vector<4x16xf32>, vector<4x16xf32> -> vector<16x16xf32>
    %c0_12 = arith.constant 0 : index
    %c0_13 = arith.constant 0 : index
    %c0_14 = arith.constant 0 : index
    %10 = vector.load %arg4[%c0_12, %c0_13, %c0_14] : memref<4x4x16xf32, #tpu.memory_space<vmem>>, vector<1x4x16xf32>
    %11 = vector.shape_cast %10 : vector<1x4x16xf32> to vector<4x16xf32>
    %cst_15 = arith.constant dense<0.000000e+00> : vector<4x16xf32>
    %12 = tpu.matmul %11, %9, %cst_15 {dimension_numbers = #tpu.dot_dimension_numbers<[1], [0], [0], [1], [0, 0, 1, 1], [], []>} : vector<4x16xf32>, vector<16x16xf32>, vector<4x16xf32> -> vector<4x16xf32>
    %13 = arith.addf %0, %12 : vector<4x16xf32>
    %c0_16 = arith.constant 0 : index
    %c0_17 = arith.constant 0 : index
    %c0_18 = arith.constant 0 : index
    %14 = vector.load %arg5[%c0_16, %c0_17, %c0_18] : memref<4x4x1xf32, #tpu.memory_space<vmem>>, vector<1x4x1xf32>
    %15 = vector.shape_cast %14 : vector<1x4x1xf32> to vector<4x1xf32>
    %16 = vector.broadcast %15 : vector<4x1xf32> to vector<4x16xf32>
    %17 = arith.addf %13, %16 : vector<4x16xf32>
    %cst_19 = arith.constant 0.000000e+00 : f32
    %18 = vector.broadcast %cst_19 : f32 to vector<4x16xf32>
    %19 = arith.cmpf oge, %17, %18 : vector<4x16xf32>
    %cst_20 = arith.constant 1.000000e-01 : f32
    %20 = vector.broadcast %cst_20 : f32 to vector<4x16xf32>
    %21 = arith.mulf %20, %17 : vector<4x16xf32>
    %22 = arith.select %19, %17, %21 : vector<4x16xi1>, vector<4x16xf32>
    %c0_21 = arith.constant 0 : index
    %c0_22 = arith.constant 0 : index
    %c0_23 = arith.constant 0 : index
    %c0_24 = arith.constant 0 : index
    %23 = vector.load %arg6[%c0_21, %c0_22, %c0_23, %c0_24] : memref<1x4x4x16xf32, #tpu.memory_space<vmem>>, vector<1x1x4x16xf32>
    %24 = vector.shape_cast %23 : vector<1x1x4x16xf32> to vector<4x16xf32>
    %25 = vector.shape_cast %22 : vector<4x16xf32> to vector<1x1x4x16xf32>
    tpu.vector_store %arg6[%c0_21, %c0_22, %c0_23, %c0_24], %25 {strides = array<i32>} : memref<1x4x4x16xf32, #tpu.memory_space<vmem>>, vector<1x1x4x16xf32>,
    %cst_25 = arith.constant 0.000000e+00 : f32
    %26 = vector.broadcast %cst_25 : f32 to vector<4x16xf32>
    %c0_26 = arith.constant 0 : index
    %c1_27 = arith.constant 1 : index
    %c0_28 = arith.constant 0 : index
    %c0_29 = arith.constant 0 : index
    %27 = vector.load %arg3[%c0_26, %c1_27, %c0_28, %c0_29] : memref<1x4x4x19xf32, #tpu.memory_space<vmem>>, vector<1x1x4x16xf32>
    %28 = vector.shape_cast %27 : vector<1x1x4x16xf32> to vector<4x16xf32>
    %c0_30 = arith.constant 0 : index
    %c1_31 = arith.constant 1 : index
    %c0_32 = arith.constant 0 : index
    %c1_33 = arith.constant 1 : index
    %29 = vector.load %arg3[%c0_30, %c1_31, %c0_32, %c1_33] : memref<1x4x4x19xf32, #tpu.memory_space<vmem>>, vector<1x1x4x16xf32>
    %30 = vector.shape_cast %29 : vector<1x1x4x16xf32> to vector<4x16xf32>
    %c0_34 = arith.constant 0 : index
    %c1_35 = arith.constant 1 : index
    %c0_36 = arith.constant 0 : index
    %c2_37 = arith.constant 2 : index
    %31 = vector.load %arg3[%c0_34, %c1_35, %c0_36, %c2_37] : memref<1x4x4x19xf32, #tpu.memory_space<vmem>>, vector<1x1x4x16xf32>
    %32 = vector.shape_cast %31 : vector<1x1x4x16xf32> to vector<4x16xf32>
    %c0_38 = arith.constant 0 : index
    %c1_39 = arith.constant 1 : index
    %c0_40 = arith.constant 0 : index
    %c3_41 = arith.constant 3 : index
    %33 = vector.load %arg3[%c0_38, %c1_39, %c0_40, %c3_41] : memref<1x4x4x19xf32, #tpu.memory_space<vmem>>, vector<1x1x4x16xf32>
    %34 = vector.shape_cast %33 : vector<1x1x4x16xf32> to vector<4x16xf32>
    %35 = tpu.concatenate %28, %30, %32, %34 in 0 : vector<4x16xf32>, vector<4x16xf32>, vector<4x16xf32>, vector<4x16xf32> -> vector<16x16xf32>
    %c1_42 = arith.constant 1 : index
    %c0_43 = arith.constant 0 : index
    %c0_44 = arith.constant 0 : index
    %36 = vector.load %arg4[%c1_42, %c0_43, %c0_44] : memref<4x4x16xf32, #tpu.memory_space<vmem>>, vector<1x4x16xf32>
    %37 = vector.shape_cast %36 : vector<1x4x16xf32> to vector<4x16xf32>
    %cst_45 = arith.constant dense<0.000000e+00> : vector<4x16xf32>
    %38 = tpu.matmul %37, %35, %cst_45 {dimension_numbers = #tpu.dot_dimension_numbers<[1], [0], [0], [1], [0, 0, 1, 1], [], []>} : vector<4x16xf32>, vector<16x16xf32>, vector<4x16xf32> -> vector<4x16xf32>
    %39 = arith.addf %26, %38 : vector<4x16xf32>
    %c1_46 = arith.constant 1 : index
    %c0_47 = arith.constant 0 : index
    %c0_48 = arith.constant 0 : index
    %40 = vector.load %arg5[%c1_46, %c0_47, %c0_48] : memref<4x4x1xf32, #tpu.memory_space<vmem>>, vector<1x4x1xf32>
    %41 = vector.shape_cast %40 : vector<1x4x1xf32> to vector<4x1xf32>
    %42 = vector.broadcast %41 : vector<4x1xf32> to vector<4x16xf32>
    %43 = arith.addf %39, %42 : vector<4x16xf32>
    %cst_49 = arith.constant 0.000000e+00 : f32
    %44 = vector.broadcast %cst_49 : f32 to vector<4x16xf32>
    %45 = arith.cmpf oge, %43, %44 : vector<4x16xf32>
    %cst_50 = arith.constant 1.000000e-01 : f32
    %46 = vector.broadcast %cst_50 : f32 to vector<4x16xf32>
    %47 = arith.mulf %46, %43 : vector<4x16xf32>
    %48 = arith.select %45, %43, %47 : vector<4x16xi1>, vector<4x16xf32>
    %c0_51 = arith.constant 0 : index
    %c1_52 = arith.constant 1 : index
    %c0_53 = arith.constant 0 : index
    %c0_54 = arith.constant 0 : index
    %49 = vector.load %arg6[%c0_51, %c1_52, %c0_53, %c0_54] : memref<1x4x4x16xf32, #tpu.memory_space<vmem>>, vector<1x1x4x16xf32>
    %50 = vector.shape_cast %49 : vector<1x1x4x16xf32> to vector<4x16xf32>
    %51 = vector.shape_cast %48 : vector<4x16xf32> to vector<1x1x4x16xf32>
    tpu.vector_store %arg6[%c0_51, %c1_52, %c0_53, %c0_54], %51 {strides = array<i32>} : memref<1x4x4x16xf32, #tpu.memory_space<vmem>>, vector<1x1x4x16xf32>,
    %cst_55 = arith.constant 0.000000e+00 : f32
    %52 = vector.broadcast %cst_55 : f32 to vector<4x16xf32>
    %c0_56 = arith.constant 0 : index
    %c2_57 = arith.constant 2 : index
    %c0_58 = arith.constant 0 : index
    %c0_59 = arith.constant 0 : index
    %53 = vector.load %arg3[%c0_56, %c2_57, %c0_58, %c0_59] : memref<1x4x4x19xf32, #tpu.memory_space<vmem>>, vector<1x1x4x16xf32>
    %54 = vector.shape_cast %53 : vector<1x1x4x16xf32> to vector<4x16xf32>
    %c0_60 = arith.constant 0 : index
    %c2_61 = arith.constant 2 : index
    %c0_62 = arith.constant 0 : index
    %c1_63 = arith.constant 1 : index
    %55 = vector.load %arg3[%c0_60, %c2_61, %c0_62, %c1_63] : memref<1x4x4x19xf32, #tpu.memory_space<vmem>>, vector<1x1x4x16xf32>
    %56 = vector.shape_cast %55 : vector<1x1x4x16xf32> to vector<4x16xf32>
    %c0_64 = arith.constant 0 : index
    %c2_65 = arith.constant 2 : index
    %c0_66 = arith.constant 0 : index
    %c2_67 = arith.constant 2 : index
    %57 = vector.load %arg3[%c0_64, %c2_65, %c0_66, %c2_67] : memref<1x4x4x19xf32, #tpu.memory_space<vmem>>, vector<1x1x4x16xf32>
    %58 = vector.shape_cast %57 : vector<1x1x4x16xf32> to vector<4x16xf32>
    %c0_68 = arith.constant 0 : index
    %c2_69 = arith.constant 2 : index
    %c0_70 = arith.constant 0 : index
    %c3_71 = arith.constant 3 : index
    %59 = vector.load %arg3[%c0_68, %c2_69, %c0_70, %c3_71] : memref<1x4x4x19xf32, #tpu.memory_space<vmem>>, vector<1x1x4x16xf32>
    %60 = vector.shape_cast %59 : vector<1x1x4x16xf32> to vector<4x16xf32>
    %61 = tpu.concatenate %54, %56, %58, %60 in 0 : vector<4x16xf32>, vector<4x16xf32>, vector<4x16xf32>, vector<4x16xf32> -> vector<16x16xf32>
    %c2_72 = arith.constant 2 : index
    %c0_73 = arith.constant 0 : index
    %c0_74 = arith.constant 0 : index
    %62 = vector.load %arg4[%c2_72, %c0_73, %c0_74] : memref<4x4x16xf32, #tpu.memory_space<vmem>>, vector<1x4x16xf32>
    %63 = vector.shape_cast %62 : vector<1x4x16xf32> to vector<4x16xf32>
    %cst_75 = arith.constant dense<0.000000e+00> : vector<4x16xf32>
    %64 = tpu.matmul %63, %61, %cst_75 {dimension_numbers = #tpu.dot_dimension_numbers<[1], [0], [0], [1], [0, 0, 1, 1], [], []>} : vector<4x16xf32>, vector<16x16xf32>, vector<4x16xf32> -> vector<4x16xf32>
    %65 = arith.addf %52, %64 : vector<4x16xf32>
    %c2_76 = arith.constant 2 : index
    %c0_77 = arith.constant 0 : index
    %c0_78 = arith.constant 0 : index
    %66 = vector.load %arg5[%c2_76, %c0_77, %c0_78] : memref<4x4x1xf32, #tpu.memory_space<vmem>>, vector<1x4x1xf32>
    %67 = vector.shape_cast %66 : vector<1x4x1xf32> to vector<4x1xf32>
    %68 = vector.broadcast %67 : vector<4x1xf32> to vector<4x16xf32>
    %69 = arith.addf %65, %68 : vector<4x16xf32>
    %cst_79 = arith.constant 0.000000e+00 : f32
    %70 = vector.broadcast %cst_79 : f32 to vector<4x16xf32>
    %71 = arith.cmpf oge, %69, %70 : vector<4x16xf32>
    %cst_80 = arith.constant 1.000000e-01 : f32
    %72 = vector.broadcast %cst_80 : f32 to vector<4x16xf32>
    %73 = arith.mulf %72, %69 : vector<4x16xf32>
    %74 = arith.select %71, %69, %73 : vector<4x16xi1>, vector<4x16xf32>
    %c0_81 = arith.constant 0 : index
    %c2_82 = arith.constant 2 : index
    %c0_83 = arith.constant 0 : index
    %c0_84 = arith.constant 0 : index
    %75 = vector.load %arg6[%c0_81, %c2_82, %c0_83, %c0_84] : memref<1x4x4x16xf32, #tpu.memory_space<vmem>>, vector<1x1x4x16xf32>
    %76 = vector.shape_cast %75 : vector<1x1x4x16xf32> to vector<4x16xf32>
    %77 = vector.shape_cast %74 : vector<4x16xf32> to vector<1x1x4x16xf32>
    tpu.vector_store %arg6[%c0_81, %c2_82, %c0_83, %c0_84], %77 {strides = array<i32>} : memref<1x4x4x16xf32, #tpu.memory_space<vmem>>, vector<1x1x4x16xf32>,
    %cst_85 = arith.constant 0.000000e+00 : f32
    %78 = vector.broadcast %cst_85 : f32 to vector<4x16xf32>
    %c0_86 = arith.constant 0 : index
    %c3_87 = arith.constant 3 : index
    %c0_88 = arith.constant 0 : index
    %c0_89 = arith.constant 0 : index
    %79 = vector.load %arg3[%c0_86, %c3_87, %c0_88, %c0_89] : memref<1x4x4x19xf32, #tpu.memory_space<vmem>>, vector<1x1x4x16xf32>
    %80 = vector.shape_cast %79 : vector<1x1x4x16xf32> to vector<4x16xf32>
    %c0_90 = arith.constant 0 : index
    %c3_91 = arith.constant 3 : index
    %c0_92 = arith.constant 0 : index
    %c1_93 = arith.constant 1 : index
    %81 = vector.load %arg3[%c0_90, %c3_91, %c0_92, %c1_93] : memref<1x4x4x19xf32, #tpu.memory_space<vmem>>, vector<1x1x4x16xf32>
    %82 = vector.shape_cast %81 : vector<1x1x4x16xf32> to vector<4x16xf32>
    %c0_94 = arith.constant 0 : index
    %c3_95 = arith.constant 3 : index
    %c0_96 = arith.constant 0 : index
    %c2_97 = arith.constant 2 : index
    %83 = vector.load %arg3[%c0_94, %c3_95, %c0_96, %c2_97] : memref<1x4x4x19xf32, #tpu.memory_space<vmem>>, vector<1x1x4x16xf32>
    %84 = vector.shape_cast %83 : vector<1x1x4x16xf32> to vector<4x16xf32>
    %c0_98 = arith.constant 0 : index
    %c3_99 = arith.constant 3 : index
    %c0_100 = arith.constant 0 : index
    %c3_101 = arith.constant 3 : index
    %85 = vector.load %arg3[%c0_98, %c3_99, %c0_100, %c3_101] : memref<1x4x4x19xf32, #tpu.memory_space<vmem>>, vector<1x1x4x16xf32>
    %86 = vector.shape_cast %85 : vector<1x1x4x16xf32> to vector<4x16xf32>
    %87 = tpu.concatenate %80, %82, %84, %86 in 0 : vector<4x16xf32>, vector<4x16xf32>, vector<4x16xf32>, vector<4x16xf32> -> vector<16x16xf32>
    %c3_102 = arith.constant 3 : index
    %c0_103 = arith.constant 0 : index
    %c0_104 = arith.constant 0 : index
    %88 = vector.load %arg4[%c3_102, %c0_103, %c0_104] : memref<4x4x16xf32, #tpu.memory_space<vmem>>, vector<1x4x16xf32>
    %89 = vector.shape_cast %88 : vector<1x4x16xf32> to vector<4x16xf32>
    %cst_105 = arith.constant dense<0.000000e+00> : vector<4x16xf32>
    %90 = tpu.matmul %89, %87, %cst_105 {dimension_numbers = #tpu.dot_dimension_numbers<[1], [0], [0], [1], [0, 0, 1, 1], [], []>} : vector<4x16xf32>, vector<16x16xf32>, vector<4x16xf32> -> vector<4x16xf32>
    %91 = arith.addf %78, %90 : vector<4x16xf32>
    %c3_106 = arith.constant 3 : index
    %c0_107 = arith.constant 0 : index
    %c0_108 = arith.constant 0 : index
    %92 = vector.load %arg5[%c3_106, %c0_107, %c0_108] : memref<4x4x1xf32, #tpu.memory_space<vmem>>, vector<1x4x1xf32>
    %93 = vector.shape_cast %92 : vector<1x4x1xf32> to vector<4x1xf32>
    %94 = vector.broadcast %93 : vector<4x1xf32> to vector<4x16xf32>
    %95 = arith.addf %91, %94 : vector<4x16xf32>
    %cst_109 = arith.constant 0.000000e+00 : f32
    %96 = vector.broadcast %cst_109 : f32 to vector<4x16xf32>
    %97 = arith.cmpf oge, %95, %96 : vector<4x16xf32>
    %cst_110 = arith.constant 1.000000e-01 : f32
    %98 = vector.broadcast %cst_110 : f32 to vector<4x16xf32>
    %99 = arith.mulf %98, %95 : vector<4x16xf32>
    %100 = arith.select %97, %95, %99 : vector<4x16xi1>, vector<4x16xf32>
    %c0_111 = arith.constant 0 : index
    %c3_112 = arith.constant 3 : index
    %c0_113 = arith.constant 0 : index
    %c0_114 = arith.constant 0 : index
    %101 = vector.load %arg6[%c0_111, %c3_112, %c0_113, %c0_114] : memref<1x4x4x16xf32, #tpu.memory_space<vmem>>, vector<1x1x4x16xf32>
    %102 = vector.shape_cast %101 : vector<1x1x4x16xf32> to vector<4x16xf32>
    %103 = vector.shape_cast %100 : vector<4x16xf32> to vector<1x1x4x16xf32>
    tpu.vector_store %arg6[%c0_111, %c3_112, %c0_113, %c0_114], %103 {strides = array<i32>} : memref<1x4x4x16xf32, #tpu.memory_space<vmem>>, vector<1x1x4x16xf32>,
    return
  }
  func.func @transform_0(%arg0: i32, %arg1: i32, %arg2: i32) -> (i32, i32, i32, i32) {
    %c0_i32 = arith.constant 0 : i32
    %c0_i32_0 = arith.constant 0 : i32
    %c0_i32_1 = arith.constant 0 : i32
    return %arg2, %arg0, %c0_i32, %c0_i32_0 : i32, i32, i32, i32
  }
  func.func @transform_1(%arg0: i32, %arg1: i32, %arg2: i32) -> (i32, i32, i32) {
    %c0_i32 = arith.constant 0 : i32
    %c0_i32_0 = arith.constant 0 : i32
    return %arg0, %arg1, %c0_i32 : i32, i32, i32
  }
  func.func @transform_2(%arg0: i32, %arg1: i32, %arg2: i32) -> (i32, i32, i32) {
    %c0_i32 = arith.constant 0 : i32
    %c0_i32_0 = arith.constant 0 : i32
    return %arg0, %arg1, %c0_i32 : i32, i32, i32
  }
  func.func @transform_3(%arg0: i32, %arg1: i32, %arg2: i32) -> (i32, i32, i32, i32) {
    %c0_i32 = arith.constant 0 : i32
    %c0_i32_0 = arith.constant 0 : i32
    return %arg2, %arg0, %arg1, %c0_i32 : i32, i32, i32, i32
  }
}

</mosaic_0001>

<bundles_post_ra>
// kernel: tpu_custom_call.1
= control target key start
LH: loop header
LB: loop body
LE: loop exit
PB: predicated region body
PF: predicated region fallthrough
CT: control target
= control target key end

     0   :  { %8 = vsyncpa [#allocation3], 0  ;;  %s1410_s0 = inlined_call_operand.hbm [shape: f32[2,4,4,19], index: 0, kind: input, shape index: {}]   ;;  %s1411_s1 = inlined_call_operand.vmem [shape: f32[4,4,16], index: 1, kind: input, shape index: {}]   ;;  %s1412_s2 = inlined_call_operand.vmem [shape: f32[4,4,1], index: 2, kind: input, shape index: {}]   ;;  %s1413_s3 = inlined_call_operand.hbm [shape: f32[2,4,4,16], index: 3, kind: output, shape index: {}]  }
   0x1   :  { %10 = vsyncpa [#allocation3 + $0x1], 0 }
   0x2   :  { %11 = vsyncpa [#allocation4], 0 }
   0x3   :  { %13 = vsyncpa [#allocation4 + $0x1], 0  ;;  %s1174_s12 = smov 0   ;;  %s1176_s13 = smov 0  }
   0x4   :  { %s1178_s14 = smov 0   ;;  %s1180_s15 = smov 0  }
   0x5   :  { %s1182_s16 = smov 0   ;;  %s1184_s17 = smov 0  }
   0x6 LB: > { %s835_s18 = sadd.s32 4294967295, %s1139_s17   ;;  %s836_s19 = sadd.s32 4294967294, %s1139_s17   ;;  %s1139_s17 = sphi %s1184_s17, %s19_s17   ;;  %s1135_s16 = sphi %s1182_s16, %s1428_s16   ;;  %s1131_s15 = sphi %s1180_s15, %s1427_s15   ;;  %s1127_s14 = sphi %s1178_s14, %s1426_s14   ;;  %s1123_s13 = sphi %s1176_s13, %s1425_s13   ;;  %s1119_s12 = sphi %s1174_s12, %s1424_s12  }
   0x7   : > { %s31_s20 = sadd.s32 1, %s1135_s16  ;;  %s47_s21 = sadd.s32 1, %s1127_s14 }
   0x8   : > { %p32_p0 = scmp.ge.s32.totalorder %s31_s20, 2  ;;  %p54_p1 = scmp.ne.s32.totalorder %s1127_s14, %s1123_s13 }
   0x9   : > { %p55_p2 = scmp.eq.s32.totalorder %s1139_s17, 0  ;;  %p60_p3 = scmp.ne.s32.totalorder %s1123_s13, %s1119_s12 }
   0xa   : > { %s1430_s20 = smov (%p32_p0, %s31_s20), 0  ;;  %p61_p5 = scmp.eq.s32.totalorder %s835_s18, 0 }
   0xb   : > { %p1215_p4 = por %p55_p2, %p54_p1  ;;  %s42_s23 = ssub.s32 %s1135_s16, %s1430_s20 }
   0xc   : > { %p144_p6 = scmp.eq.s32.totalorder %s835_s18, 1  ;;  %p45_p7 = scmp.eq.s32.totalorder %s42_s23, 0 }
   0xd   : > { %p1221_p8 = por %p61_p5, %p60_p3  ;;  %p150_p10 = scmp.eq.s32.totalorder %s836_s19, 1 }
   0xe   : > { %p1225_p9 = por %p144_p6, %p54_p1  ;;  %p934_p13 = scmp.lt.s32.totalorder %s1139_s17, 2 }
   0xf   : > { %s1230_s26 = scalar_select %p45_p7, %s1127_s14, %s47_s21  }
  0x10   : > { %s1417_s25 = scalar_select %p1225_p9, 1, 0 }
  0x11   : > { %p1232_p11 = por %p150_p10, %p60_p3  ;;  %s194_s28 = sand.u32 1, %s1127_s14  }
  0x12   : > { %s841_s29 = sshll.u32 %s194_s28, 4  ;;  %s868_s30 = sshll.u32 %s1135_s16, 8 }
  0x13   : > { %s1418_s27 = scalar_select %p1232_p11, 1, 0 }
  0x14   : > { %s1243_s6 = scalar_lea.hbm %s1410_s0, %s868_s30  ;;  %s198_s7 = scalar_lea.vmem [#allocation2], %s841_s29 }
  0x15   : > { %s207_s8 = sshll.u32 %s198_s7, 4  ;;  %p1249_p0 = pnand %p934_p13, %p1215_p4  ;;  %s1245_s8 = int_to_ptr.vmem [resolvable:$true] %s207_s8 }
  0x16   : > { %s1254_s10 = scalar_lea.sflag [#allocation3], %s194_s28  ;;  %s1027_s11 = scalar_lea.hbm %s1243_s6, 256 }
  0x17   : > { %p1028_p2 = scmp.ne.s32.totalorder %s1243_s6, %s1027_s11  ;;  %p1029_p3 = pneg %p1249_p0 }
  0x18   : > { %s1032_s21 = scalar_lea.hbm %s1410_s0, 512  ;;  %p1033_p4 = scmp.lt.u32.totalorder %s1243_s6, %s1410_s0 }
  0x19   : > { %p1030_p5 = pnand %p1029_p3, %p1028_p2  ;;  %p1034_p7 = scmp.lt.u32.totalorder %s1032_s21, %s1027_s11 }
  0x1a   : > { %p1036_p13 = scmp.lt.u32.totalorder %s1027_s11, %s1243_s6 }
  0x1b   : > { %p1031_p6 = pneg %p1030_p5  ;;  %p1035_p10 = por %p1034_p7, %p1033_p4 }
  0x1d   : > { %p1037_p12 = por %p1036_p13, %p1035_p10 }
  0x1f   : > { %p1038_p1 = pnand %p1037_p12, %p1031_p6 }
  0x21   : > { %1041 = shalt.err (!%p1038_p1)
}
  0x22   : > { %s1042_s28 = scalar_lea.vmem %s1245_s8, 256  ;;  %s1141_s29 = smov [#allocation2]  }
  0x23   : > { %p1043_p2 = scmp.ne.s32.totalorder %s1245_s8, %s1042_s28  ;;  %s1047_s30 = sshll.u32 %s1141_s29, 4  ;;  %s1048_s30 = int_to_ptr.vmem [resolvable:$false] %s1047_s30 }
  0x24   : > { %s1049_s4 = scalar_lea.vmem %s1048_s30, 512  ;;  %p1050_p9 = scmp.lt.s32.totalorder %s1245_s8, %s1048_s30 }
  0x25   : > { %p1045_p5 = pnand %p1043_p2, %p1029_p3  ;;  %p1051_p4 = scmp.lt.s32.totalorder %s1049_s4, %s1042_s28 }
  0x27   : > { %p1046_p11 = pneg %p1045_p5  ;;  %p1052_p7 = por %p1051_p4, %p1050_p9 }
  0x29   : > { %p1053_p10 = pnand %p1052_p7, %p1046_p11 }
  0x2b   : > { %1056 = shalt.err (!%p1053_p10)
}
  0x2c   : > { %s1142_s5 = smov 64   ;;  %s1143_s7 = smov 4  }
  0x2d   : > { %929 = dma.hbm_to_vmem [thread:$0]  (!%p1249_p0), %s1243_s6, 256, %s1245_s8, %s1254_s10, %s1142_s5, %s1142_s5, %s1143_s7  }
  0x2e   : > { %p215_p12 = scmp.lt.s32.totalorder %s1139_s17, 3  ;;  %p1420_p1 = scmp.ge.s32.totalorder %s1139_s17, 1 }
  0x30   : > { %p216_p3 = pnand %p1420_p1, %p215_p12 }
  0x31   : > { %s1286_s11 = sand.u32 (!%p216_p3), 1, %s1123_s13  }
  0x32   : > { %219 = sbr.rel (%p216_p3) target bundleno = 426 (0x1aa), region = 32  ;;  %s845_s18 = sshll.u32 (!%p216_p3), %s1286_s11, 4 }
  0x33   : > { %s222_s19 = scalar_lea.sflag (!%p216_p3), [#allocation3], %s1286_s11  ;;  %s225_s21 = scalar_lea.vmem (!%p216_p3), [#allocation2], %s845_s18 }
  0x39   : > { %1110 = dma.done.wait (%p1221_p8), %s222_s19, 256  }
  0x3a   : > { %1112 = vsyncadd (%p1221_p8), %s222_s19, 4294967040  ;;  %v1144_v0 = vmov 0.0|0.0   ;;  %v284_v1 = vld [vmem:[%s225_s21] sm:$0xf]  ;;  %v848_v2 = vld [vmem:[%s225_s21 + $0x4] sm:$0xf] }
  0x3b   : > { %910 = vmatprep.subr.bf16.mxu0 %v1144_v0  ;;  %913 = vmatprep.subr.bf16.mxu1 %v1144_v0  ;;  %v1298_v3 = vld [vmem:[%s225_s21 + $0x8] sm:$0xf]  ;;  %v995_v4 = vpack.i.bf16 %v848_v2, %v284_v1  ;;  %v286_v5 = vrot.slane %v284_v1, 4  ;;  %v388_v6 = vrot.slane %v848_v2, 4  ;;  %v858_v8 = vld [vmem:[%s225_s21 + $0xc] sm:$0xf] }
  0x3c   : > { %v490_v7 = vrot.slane %v1298_v3, 4  ;;  %v592_v9 = vrot.slane %v858_v8, 4  ;;  %s1145_s6 = smov 126   ;;  %vm1146_vm0 = vmmov 0   ;;  %v1147_v11 = vmov 0.0   ;;  %s1148_s24 = smov 125  }
  0x3d   : > { %996 = vrot.lane.b32.xlu0 %v995_v4, %s1145_s6  ;;  %v1010_v10 = vpack.i.bf16 %v388_v6, %v286_v5  ;;  %886 = vmatprep.mubr.msk.f32.mxu0 %vm1146_vm0, %v1147_v11  ;;  %s1149_s8 = smov 127   ;;  %v1005_v13 = vpack.i.bf16 %v858_v8, %v1298_v3  ;;  %v1150_v14 = vmov 0   ;;  %v300_v15 = vld [vmem:[%s1412_s2] sm:$0xf]  ;;  %v850_v16 = vld [vmem:[%s1412_s2 + $0x4] sm:$0xf] }
  0x3e   : > { %893 = vmatprep.mubr.msk.f32.mxu1 %vm1146_vm0, %v1147_v11  ;;  %v1015_v12 = vpack.i.bf16 %v592_v9, %v490_v7  ;;  %1025 = vset.pattern.permute.xlu0 %v1150_v14  ;;  %v860_v17 = vld [vmem:[%s1412_s2 + $0xc] sm:$0xf]  ;;  %v855_v18 = vld [vmem:[%s1412_s2 + $0x8] sm:$0xf]  ;;  %vm296_vm1 = vcmask 1043456   ;;  %vm306_vm2 = vcmask 130048  }
  0x3f   : > { %1011 = vrot.lane.b32.xlu1 %v1010_v10, %s1148_s24  ;;  %v299_v41 = vld [vmem:[%s1411_s1] sm:$0xf]  ;;  %v849_v42 = vld [vmem:[%s1411_s1 + $0x4] sm:$0xf]  ;;  %v854_v51 = vld [vmem:[%s1411_s1 + $0x8] sm:$0xf] }
  0x40   : > { %1026 = vset.pattern.permute.xlu1 %v1150_v14  ;;  %v859_v52 = vld [vmem:[%s1411_s1 + $0xc] sm:$0xf]  ;;  %vm383_vm3 = vcmask 125952   ;;  %s263_s10 = scalar_lea.vmem [#allocation5], %s845_s18  ;;  %s869_s23 = sshll.u32 %s1131_s15, 8 }
  0x41   : > { %1001 = vrot.lane.b32.xlu0 %v1010_v10, %s1149_s8  ;;  %s708_s22 = sshll.u32 %s263_s10, 4  ;;  %s1359_s29 = scalar_lea.hbm %s1413_s3, %s869_s23  ;;  %s1354_s22 = int_to_ptr.vmem [resolvable:$true] %s708_s22 }
  0x42   : > { %s692_s15 = scalar_lea.sflag [#allocation4], %s1286_s11  ;;  %s1057_s30 = scalar_lea.vmem %s1354_s22, 256 }
  0x43   : > { %1016 = vrot.lane.b32.xlu1 %v1015_v12, %s1149_s8  ;;  %p1058_p8 = scmp.ne.s32.totalorder %s1354_s22, %s1057_s30  ;;  %p1421_p9 = scmp.ne.s32.totalorder %s1417_s25, 0 }
  0x44   : > { %s1151_s4 = smov [#allocation5]  }
  0x45   : > { %1006 = vrot.lane.b32.xlu0 %v1005_v13, %s1145_s6  ;;  %p1059_p11 = pnand %p1058_p8, %p1421_p9  ;;  %s1061_s5 = sshll.u32 %s1151_s4, 4  ;;  %s1062_s5 = int_to_ptr.vmem [resolvable:$false] %s1061_s5 }
  0x46   : > { %s1063_s7 = scalar_lea.vmem %s1062_s5, 512  ;;  %p1064_p6 = scmp.lt.s32.totalorder %s1354_s22, %s1062_s5 }
  0x47   : > { %1021 = vrot.lane.b32.xlu1 %v1015_v12, %s1148_s24  ;;  %p1060_p0 = pneg %p1059_p11  ;;  %p1065_p13 = scmp.lt.s32.totalorder %s1063_s7, %s1057_s30 }
  0x49   : > { %303 = vperm.xlu0 %1025, %v300_v15   ;;  %p1066_p2 = por %p1065_p13, %p1064_p6 }
  0x4b   : > { %406 = vperm.xlu1 %1026, %v850_v16   ;;  %p1067_p5 = pnand %p1066_p2, %p1060_p0 }
  0x4d   : > { %610 = vperm.xlu0 %1025, %v860_v17  }
  0x4f   : > { %508 = vperm.xlu1 %1026, %v855_v18  }
  0xaf   : > { %v997_v19 = vpop.permute.xlu0 %996 }
  0xb0   : > { %v999_v21 = vunpack.i.h.bf16 %v997_v19  ;;  %v998_v22 = vunpack.i.l.bf16 %v997_v19 }
  0xb1   : > { %v1012_v20 = vpop.permute.xlu1 %1011 }
  0xb2   : > { %v1014_v23 = vunpack.i.h.bf16 %v1012_v20  ;;  %v1013_v24 = vunpack.i.l.bf16 %v1012_v20 }
  0xb3   : > { %v1002_v25 = vpop.permute.xlu0 %1001 }
  0xb4   : > { %v1004_v26 = vunpack.i.h.bf16 %v1002_v25  ;;  %v1003_v27 = vunpack.i.l.bf16 %v1002_v25  ;;  %v298_v30 = vsel %vm296_vm1, %v998_v22, %v1013_v24  ;;  %v399_v32 = vsel %vm296_vm1, %v999_v21, %v1014_v23 }
  0xb5   : > { %v1017_v28 = vpop.permute.xlu1 %1016 }
  0xb6   : > { %v297_v29 = vsel %vm296_vm1, %v284_v1, %v1003_v27  ;;  %v398_v31 = vsel %vm296_vm1, %v848_v2, %v1004_v26  ;;  %v1019_v33 = vunpack.i.h.bf16 %v1017_v28  ;;  %v1018_v37 = vunpack.i.l.bf16 %v1017_v28 }
  0xb7   : > { %v1007_v34 = vpop.permute.xlu0 %1006  ;;  %v911_v35 = vpack.c.bf16 %v298_v30, %v297_v29  ;;  %v914_v36 = vpack.c.bf16 %v399_v32, %v398_v31 }
  0xb8   : > { %v1009_v38 = vunpack.i.h.bf16 %v1007_v34  ;;  %v1008_v39 = vunpack.i.l.bf16 %v1007_v34  ;;  %v602_v45 = vsel %vm296_vm1, %v858_v8, %v1019_v33  ;;  %v500_v46 = vsel %vm296_vm1, %v1298_v3, %v1018_v37 }
  0xb9   : > { %v1022_v40 = vpop.permute.xlu1 %1021  ;;  %912 = vmatpush3.bf16.msra.mxu0 %v911_v35  ;;  %915 = vmatpush3.bf16.msra.mxu1 %v914_v36 }
  0xba   : > { %v1024_v43 = vunpack.i.h.bf16 %v1022_v40  ;;  %v1023_v44 = vunpack.i.l.bf16 %v1022_v40  ;;  %916 = vmatprep.subr.bf16.mxu0 %v1144_v0  ;;  %919 = vmatprep.subr.bf16.mxu1 %v1144_v0 }
  0xbc   : > { %v603_v47 = vsel %vm296_vm1, %v1009_v38, %v1024_v43  ;;  %v501_v48 = vsel %vm296_vm1, %v1008_v39, %v1023_v44  ;;  %887 = vmatmul.mubr.msk.f32.vlgmr.msra.gmra.mrb[0].mxu0 %vm306_vm2, %v299_v41  ;;  %894 = vmatmul.mubr.msk.f32.vlgmr.msra.gmra.mrb[0].mxu1 %vm306_vm2, %v849_v42 }
  0xbd   : > { %v920_v49 = vpack.c.bf16 %v603_v47, %v602_v45  ;;  %v917_v50 = vpack.c.bf16 %v501_v48, %v500_v46  ;;  %900 = vmatprep.mubr.msk.f32.mxu0 %vm1146_vm0, %v1147_v11  ;;  %907 = vmatprep.mubr.msk.f32.mxu1 %vm1146_vm0, %v1147_v11 }
  0xbf   : > { %918 = vmatpush3.bf16.msra.mxu0 %v917_v50  ;;  %921 = vmatpush3.bf16.msra.mxu1 %v920_v49 }
  0xc2   : > { %901 = vmatmul.mubr.msk.f32.vlgmr.msra.gmra.mrb[2].mxu0 %vm306_vm2, %v854_v51  ;;  %908 = vmatmul.mubr.msk.f32.vlgmr.msra.gmra.mrb[2].mxu1 %vm306_vm2, %v859_v52 }
  0xc8   : > { %v304_v54 = vpop.permute.xlu0 %303 }
  0xca   : > { %v407_v53 = vpop.permute.xlu1 %406 }
  0xcc   : > { %v611_v2 = vpop.permute.xlu0 %610 }
  0xce   : > { %v509_v1 = vpop.permute.xlu1 %508 }
 0x18f   : > { %v376_v55 = vpop.f32.mrb[0].mxu0  ;;  %v478_v56 = vpop.f32.mrb[0].mxu1 }
 0x190   : > { %v377_v57 = vadd.f32 %v376_v55, %v304_v54  ;;  %v479_v58 = vadd.f32 %v478_v56, %v407_v53  ;;  %v888_v59 = vpop.f32.mrb[1].mxu0  ;;  %v895_v60 = vpop.f32.mrb[1].mxu1 }
 0x192   : > { %vm380_vm4 = vcmp.ge.f32.partialorder %v377_v57, 0.0  ;;  %v381_v61 = vmul.f32 0.1, %v377_v57  ;;  %vm482_vm5 = vcmp.ge.f32.partialorder %v479_v58, 0.0  ;;  %v483_v62 = vmul.f32 0.1, %v479_v58 }
 0x194   : > { %v382_v63 = vsel %vm380_vm4, %v377_v57, %v381_v61  ;;  %v484_v0 = vsel %vm482_vm5, %v479_v58, %v483_v62 }
 0x195   : > { %384 = vst.msk [vmem:[%s263_s10] sm:$0xf] %vm383_vm3, %v382_v63  ;;  %852 = vst.msk [vmem:[%s263_s10 + $0x4] sm:$0xf] %vm383_vm3, %v484_v0  ;;  %v580_v3 = vpop.f32.mrb[2].mxu0  ;;  %v682_v4 = vpop.f32.mrb[2].mxu1 }
 0x196   : > { %v581_v5 = vadd.f32 %v580_v3, %v509_v1  ;;  %v683_v6 = vadd.f32 %v682_v4, %v611_v2  ;;  %v902_v7 = vpop.f32.mrb[3].mxu0  ;;  %v909_v8 = vpop.f32.mrb[3].mxu1 }
 0x198   : > { %vm584_vm6 = vcmp.ge.f32.partialorder %v581_v5, 0.0  ;;  %v585_v9 = vmul.f32 0.1, %v581_v5  ;;  %vm686_vm7 = vcmp.ge.f32.partialorder %v683_v6, 0.0  ;;  %v687_v10 = vmul.f32 0.1, %v683_v6 }
 0x19a   : > { %v586_v11 = vsel %vm584_vm6, %v581_v5, %v585_v9  ;;  %v688_v12 = vsel %vm686_vm7, %v683_v6, %v687_v10 }
 0x19b   : > { %857 = vst.msk [vmem:[%s263_s10 + $0x8] sm:$0xf] %vm383_vm3, %v586_v11  ;;  %862 = vst.msk [vmem:[%s263_s10 + $0xc] sm:$0xf] %vm383_vm3, %v688_v12 }
 0x19c   : > { %1070 = shalt.err (!%p1067_p5)
}
 0x19d   : > { %s1071_s19 = scalar_lea.hbm %s1359_s29, 256  ;;  %s1075_s24 = scalar_lea.hbm %s1413_s3, 512 }
 0x19e   : > { %p1072_p4 = scmp.ne.s32.totalorder %s1359_s29, %s1071_s19  ;;  %p1076_p12 = scmp.lt.u32.totalorder %s1359_s29, %s1413_s3 }
 0x19f   : > { %p1077_p1 = scmp.lt.u32.totalorder %s1075_s24, %s1071_s19  ;;  %p1079_p8 = scmp.lt.u32.totalorder %s1071_s19, %s1359_s29 }
 0x1a0   : > { %p1073_p7 = pnand %p1072_p4, %p1421_p9 }
 0x1a1   : > { %p1078_p3 = por %p1077_p1, %p1076_p12 }
 0x1a2   : > { %p1074_p10 = pneg %p1073_p7 }
 0x1a3   : > { %p1080_p11 = por %p1079_p8, %p1078_p3 }
 0x1a5   : > { %p1081_p0 = pnand %p1080_p11, %p1074_p10 }
 0x1a7   : > { %1084 = shalt.err (!%p1081_p0)
}
 0x1a8   : > { %s1152_s10 = smov 64   ;;  %s1153_s23 = smov 4  }
 0x1a9   : > { %924 = dma.vmem_to_hbm [thread:$0]  (%p1421_p9), %s1354_s22, 256, %s1359_s29, %s692_s15, %s1152_s10, %s1152_s10, %s1153_s23  }
 0x1aa PF: > { %s723_s18 = sand.u32 1, %s1119_s12   ;;  %p1422_p6 = scmp.ne.s32.totalorder %s1418_s27, 0 }
 0x1ab   : > { %p1423_p13 = scmp.ge.s32.totalorder %s1139_s17, 2  ;;  %s724_s28 = scalar_lea.sflag [#allocation4], %s723_s18 }
 0x1ad   : > { %p931_p2 = pnand %p1423_p13, %p1422_p6 }
 0x1af   : > { %1114 = dma.done.wait (!%p931_p2), %s724_s28, 256  }
 0x1b0   : > { %1116 = vsyncadd (!%p931_p2), %s724_s28, 4294967040  ;;  %s19_s17 = sadd.s32 1, %s1139_s17   ;;  %s1424_s12 = smov %s1123_s13 }
 0x1b1   : > { %p16_p5 = scmp.ge.s32.totalorder %s19_s17, 4   ;;  %s1425_s13 = smov %s1127_s14 }
 0x1b2   : > { %s1426_s14 = smov %s1230_s26  ;;  %s1427_s15 = smov %s1135_s16 }
 0x1b3   : > { %s1428_s16 = smov %s1430_s20  ;;  %18 = sbr.rel (!%p16_p5) target bundleno = 6 (0x6), region = 95 }
 0x1ba   :  { %729 = vsyncpa [#allocation3], 1 }
 0x1bb   :  { %731 = vsyncpa [#allocation3 + $0x1], 1 }
 0x1bc   :  { %732 = vsyncpa [#allocation4], 1 }
 0x1bd   :  { %734 = vsyncpa [#allocation4 + $0x1], 1 }

</bundles_post_ra>
